<compile_context>
chip_gen: v5e
topology: v5e:2x2
jax: 0.10.0
libtpu: 0.0.40
codegen_flags: <defaults>
</compile_context>

<pallas_src>
import jax
import jax.numpy as jnp
from jax.experimental import pallas as pl
from jax.experimental.pallas import tpu as pltpu


# --------------------------------------------------------------------------- #
# Pallas kernel: elementwise passthrough on the current VMEM tile.
# --------------------------------------------------------------------------- #
def _copy_kernel(x_ref, o_ref):
    o_ref[...] = x_ref[...]


def _pallas_copy_2d(x2d, tile_rows, lanes):
    rows = x2d.shape[0]
    grid = (pl.cdiv(rows, tile_rows),)  # partial final block is masked by Pallas
    return pl.pallas_call(
        _copy_kernel,
        out_shape=jax.ShapeDtypeStruct(x2d.shape, x2d.dtype),
        grid_spec=pltpu.PrefetchScalarGridSpec(
            num_scalar_prefetch=0,
            grid=grid,
            in_specs=[pl.BlockSpec((tile_rows, lanes), lambda i: (i, 0))],
            out_specs=pl.BlockSpec((tile_rows, lanes), lambda i: (i, 0)),
        ),
        compiler_params=pltpu.CompilerParams(
            dimension_semantics=("parallel",),  # lets v7x split steps across 2 TCs
        ),
    )(x2d)


# --------------------------------------------------------------------------- #
# Wrapper helpers.
# --------------------------------------------------------------------------- #
_SUB_BYTE_DTYPES = frozenset(
    {"int4", "uint4", "int2", "uint2", "float4_e2m1fn", "bool"}
)


def _ceil_to(n, m):
    return -(-n // m) * m


def _target_block_bytes():
    # Gate block size per TPU generation: keep v5e under its 16 MiB default
    # scoped-VMEM limit (2 bufs x (in+out) x block), go bigger on v6e/v7x.
    try:
        kind = jax.devices()[0].device_kind.lower()
    except Exception:  # pragma: no cover - defensive
        kind = ""
    if "v5" in kind:
        return 3 * 1024 * 1024   # 12 MiB double-buffered footprint
    return 4 * 1024 * 1024       # 16 MiB footprint: fine on v6e / v7x


# --------------------------------------------------------------------------- #
# Module forward.
# --------------------------------------------------------------------------- #
def vit_forward(x):
    """VIT.forward is a pure identity -> return x, zero HBM traffic."""
    return x


def _vit_forward_pallas_impl(x):
    """Identity implemented as a tuned Pallas streaming copy (deliverable kernel)."""
    orig_shape = x.shape
    total = x.size
    if total == 0 or x.dtype.name in _SUB_BYTE_DTYPES:
        # TODO(synk): packed sub-byte dtypes would break the itemsize/reshape
        # math; identity semantics make passthrough exact anyway.
        return x

    itemsize = jnp.dtype(x.dtype).itemsize
    # Dtype-aware packed sublane count: 8 (f32), 16 (bf16), 32 (int8/fp8).
    sublanes = max(8, 32 // max(1, itemsize))
    # Wide lane-dense slab when the input is big enough; 128 lanes otherwise.
    lanes = 1024 if total >= sublanes * 1024 else 128

    flat = x.reshape(total)
    aligned = (total // lanes) * lanes
    if aligned == 0:
        # Whole array is smaller than one lane row: nothing worth a DMA.
        return x

    rows = aligned // lanes

    # Block size: ~3-4 MiB (generation gated), rounded to the sublane grain.
    row_bytes = lanes * itemsize
    tile_rows = max(
        sublanes, (_target_block_bytes() // row_bytes) // sublanes * sublanes
    )
    # Never larger than the (sublane-rounded) row count.
    tile_rows = min(tile_rows, _ceil_to(rows, sublanes))
    if rows > sublanes:
        # Guarantee >= 2 grid steps so both v7x TensorCores get a share.
        tile_rows = min(tile_rows, _ceil_to(-(-rows // 2), sublanes))
    tile_rows = max(tile_rows, sublanes)
    if rows <= tile_rows:
        # Single block: make its sublane dim equal the full array dim (always legal).
        tile_rows = rows

    # Lane-aligned prefix through the kernel (zero-copy reshape); tiny tail
    # (< lanes elements) handled in the wrapper.  No full-array pad/slice passes.
    prefix2d = flat[:aligned].reshape(rows, lanes)
    out_prefix = _pallas_copy_2d(prefix2d, tile_rows, lanes).reshape(aligned)

    if aligned == total:
        out_flat = out_prefix
    else:
        out_flat = jnp.concatenate([out_prefix, flat[aligned:]])
    return out_flat.reshape(orig_shape)


# Jitted so the wrapper reshape/slice/concat plumbing fuses with the pallas_call.
vit_forward_pallas = jax.jit(_vit_forward_pallas_impl)


if __name__ == "__main__":
    key = jax.random.PRNGKey(0)

    # NCHW input consistent with a vision-style module.
    x = jax.random.normal(key, (2, 4, 16, 16), dtype=jnp.float32)

    # Production path: true identity, no kernel, no HBM traffic.
    y_id = jax.block_until_ready(vit_forward(x))
    assert y_id.shape == x.shape and y_id.dtype == x.dtype
    assert bool(jnp.array_equal(y_id, x))

    # Pallas copy kernel path (lane-aligned, >= 2 grid steps).
    y = jax.block_until_ready(vit_forward_pallas(x))
    assert y.shape == x.shape and y.dtype == x.dtype
    assert bool(jnp.array_equal(y, x))

    # Non-lane-aligned shape exercises the prefix + tail path (no pad/slice passes).
    x2 = jax.random.normal(jax.random.PRNGKey(0), (3, 3, 17, 19), dtype=jnp.float32)
    y2 = jax.block_until_ready(vit_forward_pallas(x2))
    assert y2.shape == x2.shape and y2.dtype == x2.dtype
    assert bool(jnp.array_equal(y2, x2))

    # bf16 exercises the 16-sublane packed path with a single full-rows block.
    x3 = jax.random.normal(jax.random.PRNGKey(0), (2, 8, 32), dtype=jnp.bfloat16)
    y3 = jax.block_until_ready(vit_forward_pallas(x3))
    assert y3.shape == x3.shape and y3.dtype == x3.dtype
    assert bool(jnp.array_equal(y3, x3))

    print("KERNEL_OK")
</pallas_src>

<mosaic_0001>
module attributes {stable_mosaic.version = 11 : i64} {
  func.func @_copy_kernel(%arg0: i32, %arg1: memref<8x128xf32, #tpu.memory_space<vmem>>, %arg2: memref<8x128xf32, #tpu.memory_space<vmem>>) attributes {dimension_semantics = [#tpu.dimension_semantics<parallel>], iteration_bounds = array<i64: 2>, scalar_prefetch = 0 : i64, scratch_operands = 0 : i64, tpu.core_type = #tpu.core_type<tc>, window_params = [{transform_indices = @transform_0, window_bounds = array<i64: 8, 128>}, {transform_indices = @transform_1, window_bounds = array<i64: 8, 128>}]} {
    %c0 = arith.constant 0 : index
    %c0_0 = arith.constant 0 : index
    %0 = vector.load %arg1[%c0, %c0_0] : memref<8x128xf32, #tpu.memory_space<vmem>>, vector<8x128xf32>
    %c0_1 = arith.constant 0 : index
    %c0_2 = arith.constant 0 : index
    %1 = vector.load %arg2[%c0_1, %c0_2] : memref<8x128xf32, #tpu.memory_space<vmem>>, vector<8x128xf32>
    tpu.vector_store %arg2[%c0_1, %c0_2], %0 {strides = array<i32>} : memref<8x128xf32, #tpu.memory_space<vmem>>, vector<8x128xf32>,
    return
  }
  func.func @transform_0(%arg0: i32) -> (i32, i32) {
    %c0_i32 = arith.constant 0 : i32
    %c0_i32_0 = arith.constant 0 : i32
    return %arg0, %c0_i32 : i32, i32
  }
  func.func @transform_1(%arg0: i32) -> (i32, i32) {
    %c0_i32 = arith.constant 0 : i32
    %c0_i32_0 = arith.constant 0 : i32
    return %arg0, %c0_i32 : i32, i32
  }
}

</mosaic_0001>

<bundles_post_ra>
// kernel: _vit_forward_pallas_impl.1
= control target key start
LH: loop header
LB: loop body
LE: loop exit
PB: predicated region body
PF: predicated region fallthrough
CT: control target
= control target key end

     0   :  { %s188_s6 = smov 0   ;;  %s208_s0 = inlined_call_operand.vmem [shape: f32[16,128], index: 0, kind: input, shape index: {}]   ;;  %s209_s1 = inlined_call_operand.vmem [shape: f32[16,128], index: 1, kind: output, shape index: {}]  }
   0x1 LB: > { %s167_s7 = sadd.s32 4294967295, %s190_s6   ;;  %p171_p0 = scmp.ge.s32.totalorder %s190_s6, 1  ;;  %s190_s6 = sphi %s188_s6, %s11_s6  }
   0x2   : > { %p86_p1 = scmp.lt.s32.totalorder %s190_s6, 3 }
   0x4   : > { %p87_p2 = pnand %p171_p0, %p86_p1 }
   0x5   : > { %p104_p3 = scmp.lt.s32.totalorder (!%p87_p2), %s167_s7, 1 }
   0x6   : > { %90 = sbr.rel (%p87_p2) target bundleno = 16 (0x10), region = 24 }
   0xb   : > { %s211_s7 = smov (!%p104_p3, %s167_s7), 1 }
   0xc   : > { %s172_s8 = sshll.u32 %s211_s7, 3 }
   0xd   : > { %s107_s11 = scalar_lea.vmem %s208_s0, %s172_s8  ;;  %s111_s14 = scalar_lea.vmem %s209_s1, %s172_s8 }
   0xe   : > { %v112_v0 = vld [vmem:[%s107_s11] sm:$0xff] }
   0xf   : > { %113 = vst [vmem:[%s111_s14] sm:$0xff] %v112_v0 }
  0x10 PF: > { %s11_s6 = sadd.s32 1, %s190_s6  }
  0x11   : > { %p8_p4 = scmp.ge.s32.totalorder %s11_s6, 4  }
  0x13   :  { %10 = sbr.rel (!%p8_p4) target bundleno = 1 (0x1), region = 54 }

</bundles_post_ra>
